<compile_context>
chip_gen: v7x
topology: tpu7x:2x2x1
jax: 0.10.0
libtpu: 0.0.40
codegen_flags: <defaults>
</compile_context>

<pallas_src>
import jax
import jax.numpy as jnp
from jax import lax
from jax.experimental import pallas as pl
from jax.experimental.pallas import tpu as pltpu

_LANE = 128


def _sublane_multiple(dtype):
    """Native sublane packing: 8 for f32, 16 for bf16, 32 for int8/fp8."""
    return max(8, 32 // jnp.dtype(dtype).itemsize)


def _pick_tiling():
    """Generation-aware (input_block_bytes, vmem_limit_bytes)."""
    vmem_cap = None
    try:
        info = pltpu.get_tpu_info()
        vmem_cap = getattr(info, "vmem_capacity_bytes", None)
    except Exception:
        vmem_cap = None
    if vmem_cap is not None and vmem_cap >= 96 * 1024 * 1024:
        # v5e / v6e: 128 MiB physical VMEM -> 8 MiB blocks, 64 MiB scoped.
        return 8 * 1024 * 1024, 64 * 1024 * 1024
    # v7x (64 MiB physical VMEM) or unknown: 4 MiB blocks, 32 MiB scoped.
    return 4 * 1024 * 1024, 32 * 1024 * 1024


def _make_kernel(tm, slab, valid_rows, chunks_per_split, needs_mask):
    """Kernel over one (1, tm, 128) feature chunk of one batch row.

    Accumulates a lane/sublane-parallel partial sum into the resident
    (1, 1, slab, 128) f32 output block; the tiny cross-lane reduce is done once
    in the wrapper.
    """
    n_slabs = tm // slab
    unroll = max(1, min(8, n_slabs))

    def kernel(pred_ref, targ_ref, out_ref):
        s = pl.program_id(0)          # v7x 2-way reduction split (size 1 otherwise)
        k = pl.program_id(2)          # reduction (chunk) axis — last, "arbitrary"

        @pl.when(k == 0)
        def _():
            out_ref[...] = jnp.zeros_like(out_ref)

        chunk = s * chunks_per_split + k
        row0 = chunk * tm

        if needs_mask:
            slab_rows = lax.broadcasted_iota(jnp.int32, (slab, _LANE), 0)

        def body(i, acc):
            r = pl.multiple_of(i * slab, slab)
            p = pred_ref[0, pl.ds(r, slab), :].astype(jnp.float32)
            t = targ_ref[0, pl.ds(r, slab), :].astype(jnp.float32)
            d = p - t
            a = jnp.abs(d)
            l = a * (0.15 + 0.85 * a)          # 0.15*|d| + 0.85*d^2, folded
            if needs_mask:
                rows = row0 + r + slab_rows
                l = jnp.where(rows < valid_rows, l, 0.0)
            return acc + l

        acc = lax.fori_loop(0, n_slabs, body,
                            jnp.zeros((slab, _LANE), jnp.float32),
                            unroll=unroll)
        out_ref[...] += acc[None, None]

    return kernel


def _matching_loss_jax(predict, target, weights=None, is_weighted=False):
    """Fused pure-JAX path (tiny inputs / non-lane-aligned feature dims)."""
    d = predict.astype(jnp.float32) - target.astype(jnp.float32)
    a = jnp.abs(d)
    loss = a * (0.15 + 0.85 * a)
    per_batch = loss.reshape(loss.shape[0], -1).mean(axis=-1)
    if is_weighted and weights is not None:
        per_batch = weights.astype(per_batch.dtype) * per_batch
    return jnp.mean(per_batch)


def matching_loss(predict, target, weights=None, is_weighted=False, *,
                  block_bytes=None, vmem_limit_bytes=None,
                  min_pallas_bytes=1 << 20):
    """Pallas implementation of MatchingLoss.forward."""
    assert predict.shape == target.shape, "Input and target must have the same size."
    assert predict.dtype == target.dtype, "Input and target must have the same dtype."

    b = predict.shape[0]
    n = 1
    for s in predict.shape[1:]:
        n *= s

    itemsize = jnp.dtype(predict.dtype).itemsize
    sub = _sublane_multiple(predict.dtype)

    # Fast path / fallback: tiny inputs (launch overhead dominates), or a
    # feature dim that cannot be reshaped to whole (sub, 128) tiles without a
    # full-copy pad.
    # TODO(synk): handle n % (128*sub) != 0 with an in-kernel ragged tail
    # instead of falling back to XLA.
    if (b * n * itemsize) < min_pallas_bytes or n % (_LANE * sub) != 0:
        return _matching_loss_jax(predict, target, weights, is_weighted)

    if block_bytes is None or vmem_limit_bytes is None:
        bb, vl = _pick_tiling()
        block_bytes = block_bytes if block_bytes is not None else bb
        vmem_limit_bytes = vmem_limit_bytes if vmem_limit_bytes is not None else vl

    m_rows = n // _LANE                                   # multiple of `sub`

    # Feature tile: ~block_bytes per input block, a multiple of the dtype's
    # sublane packing, never larger than the data.
    tm = (block_bytes // (_LANE * itemsize)) // sub * sub
    tm = max(sub, min(tm, m_rows))

    n_chunks = -(-m_rows // tm)                            # cdiv
    needs_mask = (n_chunks * tm != m_rows)                 # tail chunk is partial

    # v7x megacore: with B == 1 the "parallel" batch axis can't use both
    # TensorCores; split the reduction axis 2-way instead (no-op on v5e/v6e).
    n_splits = 2 if (b == 1 and n_chunks >= 2 and n_chunks % 2 == 0) else 1
    chunks_per_split = n_chunks // n_splits

    # Free reshape (contiguous) — no pad, no extra HBM traffic.
    pred3d = predict.reshape(b, m_rows, _LANE)
    targ3d = target.reshape(b, m_rows, _LANE)

    kernel = _make_kernel(tm=tm, slab=sub, valid_rows=m_rows,
                          chunks_per_split=chunks_per_split,
                          needs_mask=needs_mask)

    in_map = lambda s, bi, k: (bi, s * chunks_per_split + k, 0)

    partials = pl.pallas_call(
        kernel,
        out_shape=jax.ShapeDtypeStruct((n_splits, b, sub, _LANE), jnp.float32),
        grid_spec=pltpu.PrefetchScalarGridSpec(
            num_scalar_prefetch=0,
            grid=(n_splits, b, chunks_per_split),
            in_specs=[
                pl.BlockSpec((1, tm, _LANE), in_map),
                pl.BlockSpec((1, tm, _LANE), in_map),
            ],
            out_specs=pl.BlockSpec((1, 1, sub, _LANE),
                                   lambda s, bi, k: (s, bi, 0, 0)),
        ),
        compiler_params=pltpu.CompilerParams(
            dimension_semantics=("parallel", "parallel", "arbitrary"),
            vmem_limit_bytes=vmem_limit_bytes,
        ),
    )(pred3d, targ3d)

    # One tiny cross-lane/split reduce per batch row, outside the hot loop.
    per_batch = partials.sum(axis=(0, 2, 3)) / jnp.float32(n)  # divide by TRUE N

    if is_weighted and weights is not None:
        per_batch = weights.astype(per_batch.dtype) * per_batch

    return jnp.mean(per_batch)


def _reference(predict, target, weights=None, is_weighted=False):
    """Pure-JAX reference mirroring the PyTorch forward (unfolded coefficients)."""
    d = predict.astype(jnp.float32) - target.astype(jnp.float32)
    l1 = jnp.abs(d)
    l2 = d * d
    loss = 0.1 * l1 + 0.8 * l2 + 0.05 * l1 + 0.05 * l2
    loss = loss.reshape(loss.shape[0], -1).mean(axis=-1)
    if is_weighted and weights is not None:
        loss = weights * loss
    return loss.mean()


if __name__ == "__main__":
    key = jax.random.PRNGKey(0)
    k1, k2, k3, k4, k5, k6, k7 = jax.random.split(key, 7)

    # Main case: small NCHW images, B=2 (n = 1024 -> 8 rows of 128 lanes).
    B, C, H, W = 2, 4, 16, 16
    predict = jax.random.normal(k1, (B, C, H, W), dtype=jnp.float32)
    target = jax.random.normal(k2, (B, C, H, W), dtype=jnp.float32)
    weights = jax.random.uniform(k3, (B,), dtype=jnp.float32)

    out = jax.block_until_ready(matching_loss(predict, target, min_pallas_bytes=0))
    ref = _reference(predict, target)
    assert jnp.allclose(out, ref, atol=1e-5, rtol=1e-5), (out, ref)

    out_w = jax.block_until_ready(
        matching_loss(predict, target, weights=weights, is_weighted=True,
                      min_pallas_bytes=0))
    ref_w = _reference(predict, target, weights=weights, is_weighted=True)
    assert jnp.allclose(out_w, ref_w, atol=1e-5, rtol=1e-5), (out_w, ref_w)

    # Tail-chunk masking path: m_rows=24, tm=16 -> 2 chunks, last one partial.
    p2 = jax.random.normal(k4, (2, 3, 32, 32), dtype=jnp.float32)
    t2 = jax.random.normal(k5, (2, 3, 32, 32), dtype=jnp.float32)
    out2 = jax.block_until_ready(
        matching_loss(p2, t2, min_pallas_bytes=0, block_bytes=16 * _LANE * 4))
    ref2 = _reference(p2, t2)
    assert jnp.allclose(out2, ref2, atol=1e-5, rtol=1e-5), (out2, ref2)

    # v7x-style 2-way reduction split path (B == 1, 2 chunks).
    p3 = jax.random.normal(k6, (1, 4, 32, 32), dtype=jnp.float32)
    t3 = jax.random.normal(k7, (1, 4, 32, 32), dtype=jnp.float32)
    out3 = jax.block_until_ready(
        matching_loss(p3, t3, min_pallas_bytes=0, block_bytes=16 * _LANE * 4))
    ref3 = _reference(p3, t3)
    assert jnp.allclose(out3, ref3, atol=1e-5, rtol=1e-5), (out3, ref3)

    print("KERNEL_OK")
</pallas_src>

<mosaic_0001>
module attributes {stable_mosaic.version = 11 : i64} {
  func.func @kernel(%arg0: i32, %arg1: i32, %arg2: i32, %arg3: memref<1x8x128xf32, #tpu.memory_space<vmem>>, %arg4: memref<1x8x128xf32, #tpu.memory_space<vmem>>, %arg5: memref<1x1x8x128xf32, #tpu.memory_space<vmem>>) attributes {dimension_semantics = [#tpu.dimension_semantics<parallel>, #tpu.dimension_semantics<parallel>, #tpu.dimension_semantics<arbitrary>], iteration_bounds = array<i64: 1, 2, 1>, scalar_prefetch = 0 : i64, scratch_operands = 0 : i64, tpu.core_type = #tpu.core_type<tc>, window_params = [{transform_indices = @transform_0, window_bounds = array<i64: 1, 8, 128>}, {transform_indices = @transform_1, window_bounds = array<i64: 1, 8, 128>}, {transform_indices = @transform_2, window_bounds = array<i64: 1, 1, 8, 128>}]} {
    %c0_i32 = arith.constant 0 : i32
    %0 = arith.cmpi eq, %arg2, %c0_i32 : i32
    %1 = arith.extui %0 : i1 to i32
    %c0_i32_0 = arith.constant 0 : i32
    %2 = arith.cmpi ne, %1, %c0_i32_0 : i32
    scf.if %2 {
      %cst_15 = arith.constant 0.000000e+00 : f32
      %24 = vector.broadcast %cst_15 : f32 to vector<1x1x8x128xf32>
      %c0_16 = arith.constant 0 : index
      %c0_17 = arith.constant 0 : index
      %c0_18 = arith.constant 0 : index
      %c0_19 = arith.constant 0 : index
      %25 = vector.load %arg5[%c0_16, %c0_17, %c0_18, %c0_19] : memref<1x1x8x128xf32, #tpu.memory_space<vmem>>, vector<1x1x8x128xf32>
      tpu.vector_store %arg5[%c0_16, %c0_17, %c0_18, %c0_19], %24 {strides = array<i32>} : memref<1x1x8x128xf32, #tpu.memory_space<vmem>>, vector<1x1x8x128xf32>,
    } else {
    }
    %cst = arith.constant 0.000000e+00 : f32
    %3 = vector.broadcast %cst : f32 to vector<8x128xf32>
    %c0_i32_1 = arith.constant 0 : i32
    %c8_i32 = arith.constant 8 : i32
    %4 = arith.muli %c0_i32_1, %c8_i32 : i32
    %5 = tpu.assume_multiple %4, 8 : i32
    %c0 = arith.constant 0 : index
    %6 = arith.index_cast %5 : i32 to index
    %c0_2 = arith.constant 0 : index
    %7 = vector.load %arg3[%c0, %6, %c0_2] : memref<1x8x128xf32, #tpu.memory_space<vmem>>, vector<1x8x128xf32>
    %8 = vector.shape_cast %7 : vector<1x8x128xf32> to vector<8x128xf32>
    %c0_3 = arith.constant 0 : index
    %9 = arith.index_cast %5 : i32 to index
    %c0_4 = arith.constant 0 : index
    %10 = vector.load %arg4[%c0_3, %9, %c0_4] : memref<1x8x128xf32, #tpu.memory_space<vmem>>, vector<1x8x128xf32>
    %11 = vector.shape_cast %10 : vector<1x8x128xf32> to vector<8x128xf32>
    %12 = arith.subf %8, %11 : vector<8x128xf32>
    %13 = math.absf %12 : vector<8x128xf32>
    %cst_5 = arith.constant 8.500000e-01 : f32
    %14 = vector.broadcast %cst_5 : f32 to vector<8x128xf32>
    %15 = arith.mulf %14, %13 : vector<8x128xf32>
    %cst_6 = arith.constant 1.500000e-01 : f32
    %16 = vector.broadcast %cst_6 : f32 to vector<8x128xf32>
    %17 = arith.addf %16, %15 : vector<8x128xf32>
    %18 = arith.mulf %13, %17 : vector<8x128xf32>
    %19 = arith.addf %3, %18 : vector<8x128xf32>
    %c1_i32 = arith.constant 1 : i32
    %c0_7 = arith.constant 0 : index
    %c0_8 = arith.constant 0 : index
    %c0_9 = arith.constant 0 : index
    %c0_10 = arith.constant 0 : index
    %20 = vector.load %arg5[%c0_7, %c0_8, %c0_9, %c0_10] : memref<1x1x8x128xf32, #tpu.memory_space<vmem>>, vector<1x1x8x128xf32>
    %21 = vector.shape_cast %19 : vector<8x128xf32> to vector<1x1x8x128xf32>
    %22 = arith.addf %20, %21 : vector<1x1x8x128xf32>
    %c0_11 = arith.constant 0 : index
    %c0_12 = arith.constant 0 : index
    %c0_13 = arith.constant 0 : index
    %c0_14 = arith.constant 0 : index
    %23 = vector.load %arg5[%c0_11, %c0_12, %c0_13, %c0_14] : memref<1x1x8x128xf32, #tpu.memory_space<vmem>>, vector<1x1x8x128xf32>
    tpu.vector_store %arg5[%c0_11, %c0_12, %c0_13, %c0_14], %22 {strides = array<i32>} : memref<1x1x8x128xf32, #tpu.memory_space<vmem>>, vector<1x1x8x128xf32>,
    return
  }
  func.func @transform_0(%arg0: i32, %arg1: i32, %arg2: i32) -> (i32, i32, i32) {
    %c1_i32 = arith.constant 1 : i32
    %0 = arith.muli %arg0, %c1_i32 : i32
    %1 = arith.addi %0, %arg2 : i32
    %c0_i32 = arith.constant 0 : i32
    %c0_i32_0 = arith.constant 0 : i32
    return %arg1, %1, %c0_i32 : i32, i32, i32
  }
  func.func @transform_1(%arg0: i32, %arg1: i32, %arg2: i32) -> (i32, i32, i32) {
    %c1_i32 = arith.constant 1 : i32
    %0 = arith.muli %arg0, %c1_i32 : i32
    %1 = arith.addi %0, %arg2 : i32
    %c0_i32 = arith.constant 0 : i32
    %c0_i32_0 = arith.constant 0 : i32
    return %arg1, %1, %c0_i32 : i32, i32, i32
  }
  func.func @transform_2(%arg0: i32, %arg1: i32, %arg2: i32) -> (i32, i32, i32, i32) {
    %c0_i32 = arith.constant 0 : i32
    %c0_i32_0 = arith.constant 0 : i32
    %c0_i32_1 = arith.constant 0 : i32
    return %arg0, %arg1, %c0_i32, %c0_i32_0 : i32, i32, i32, i32
  }
}

</mosaic_0001>

<bundles_post_ra>
// kernel: tpu_custom_call.1
= control target key start
LH: loop header
LB: loop body
LE: loop exit
PB: predicated region body
PF: predicated region fallthrough
CT: control target
= control target key end

     0   :  { %7 = vsyncpa [#allocation3], 0  ;;  %s843_s0 = inlined_call_operand.hbm [shape: f32[2,8,128], index: 0, kind: input, shape index: {}]   ;;  %s844_s1 = inlined_call_operand.hbm [shape: f32[2,8,128], index: 1, kind: input, shape index: {}]   ;;  %s845_s2 = inlined_call_operand.hbm [shape: f32[1,2,8,128], index: 2, kind: output, shape index: {}]  }
   0x1   :  { %9 = vsyncpa [#allocation3 + $0x1], 0 }
   0x2   :  { %10 = vsyncpa [#allocation6], 0 }
   0x3   :  { %12 = vsyncpa [#allocation6 + $0x1], 0 }
   0x4   :  { %13 = vsyncpa [#allocation4], 0 }
   0x5   :  { %15 = vsyncpa [#allocation4 + $0x1], 0  ;;  %s623_s9 = smov 0   ;;  %s625_s10 = smov 0  }
   0x6   :  { %s627_s11 = smov 0   ;;  %s629_s12 = smov 0  }
   0x7   :  { %s631_s13 = smov 0   ;;  %s633_s14 = smov 0  }
   0x8 LB: > { %s373_s15 = sadd.s32 4294967295, %s603_s14   ;;  %s374_s16 = sadd.s32 4294967294, %s603_s14   ;;  %s603_s14 = sphi %s633_s14, %s21_s14   ;;  %s599_s13 = sphi %s631_s13, %s865_s13   ;;  %s595_s12 = sphi %s629_s12, %s864_s12   ;;  %s591_s11 = sphi %s627_s11, %s863_s11   ;;  %s587_s10 = sphi %s625_s10, %s862_s10   ;;  %s583_s9 = sphi %s623_s9, %s861_s9  }
   0x9   : > { %s36_s17 = sadd.s32 1, %s599_s13  ;;  %s51_s18 = sadd.s32 1, %s591_s11 }
   0xa   : > { %p38_p0 = scmp.ge.s32.totalorder %s36_s17, 2  ;;  %p58_p1 = scmp.ne.s32.totalorder %s591_s11, %s587_s10 }
   0xb   : > { %p59_p2 = scmp.eq.s32.totalorder %s603_s14, 0  ;;  %p64_p3 = scmp.ne.s32.totalorder %s587_s10, %s583_s9 }
   0xc   : > { %s867_s17 = smov (%p38_p0, %s36_s17), 0  ;;  %p65_p5 = scmp.eq.s32.totalorder %s373_s15, 0 }
   0xd   : > { %p664_p4 = por %p59_p2, %p58_p1  ;;  %s46_s20 = ssub.s32 %s599_s13, %s867_s17 }
   0xe   : > { %p120_p6 = scmp.eq.s32.totalorder %s373_s15, 1  ;;  %p49_p7 = scmp.eq.s32.totalorder %s46_s20, 0 }
   0xf   : > { %p670_p8 = por %p65_p5, %p64_p3  ;;  %p126_p10 = scmp.eq.s32.totalorder %s374_s16, 1 }
  0x10   : > { %p674_p9 = por %p120_p6, %p58_p1  ;;  %p406_p13 = scmp.lt.s32.totalorder %s603_s14, 2 }
  0x11   : > { %s849_s21 = scalar_select %p670_p8, 1, 0 }
  0x12   : > { %s850_s22 = scalar_select %p674_p9, 1, 0 }
  0x13   : > { %s679_s23 = scalar_select %p49_p7, %s591_s11, %s51_s18  }
  0x14   : > { %p681_p11 = por %p126_p10, %p64_p3  ;;  %s688_s25 = sand.u32 1, %s591_s11  }
  0x15   : > { %s377_s26 = sshll.u32 %s688_s25, 3  ;;  %s378_s27 = sshll.u32 %s599_s13, 7 }
  0x16   : > { %s851_s24 = scalar_select %p681_p11, 1, 0 }
  0x17   : > { %s697_s30 = scalar_lea.hbm %s843_s0, %s378_s27  ;;  %s150_s3 = scalar_lea.vmem [#allocation2], %s377_s26 }
  0x18   : > { %s159_s4 = sshll.u32 %s150_s3, 4  ;;  %p705_p0 = pnand %p406_p13, %p664_p4  ;;  %s701_s4 = int_to_ptr.vmem [resolvable:$true] %s159_s4 }
  0x19   : > { %s147_s6 = scalar_lea.sflag [#allocation3], %s688_s25  ;;  %s457_s7 = scalar_lea.hbm %s697_s30, 128 }
  0x1a   : > { %p458_p3 = scmp.ne.s32.totalorder %s697_s30, %s457_s7  ;;  %p459_p5 = pneg %p705_p0 }
  0x1b   : > { %s462_s16 = scalar_lea.hbm %s843_s0, 256  ;;  %p463_p4 = scmp.lt.u32.totalorder %s697_s30, %s843_s0 }
  0x1c   : > { %p460_p6 = pnand %p459_p5, %p458_p3  ;;  %p464_p10 = scmp.lt.u32.totalorder %s462_s16, %s457_s7 }
  0x1d   : > { %p466_p12 = scmp.lt.u32.totalorder %s457_s7, %s697_s30 }
  0x1e   : > { %p461_p7 = pneg %p460_p6  ;;  %p465_p13 = por %p464_p10, %p463_p4 }
  0x20   : > { %p467_p1 = por %p466_p12, %p465_p13 }
  0x22   : > { %p468_p2 = pnand %p467_p1, %p461_p7 }
  0x24   : > { %471 = shalt.err (!%p468_p2)
}
  0x25   : > { %s472_s20 = scalar_lea.vmem %s701_s4, 128  ;;  %s605_s28 = smov [#allocation2]  }
  0x26   : > { %p473_p3 = scmp.ne.s32.totalorder %s701_s4, %s472_s20  ;;  %s477_s29 = sshll.u32 %s605_s28, 4  ;;  %s478_s29 = int_to_ptr.vmem [resolvable:$false] %s477_s29 }
  0x27   : > { %s479_s3 = scalar_lea.vmem %s478_s29, 256  ;;  %p480_p9 = scmp.lt.s32.totalorder %s701_s4, %s478_s29 }
  0x28   : > { %p475_p6 = pnand %p473_p3, %p459_p5  ;;  %p481_p4 = scmp.lt.s32.totalorder %s479_s3, %s472_s20 }
  0x2a   : > { %p476_p11 = pneg %p475_p6  ;;  %p482_p10 = por %p481_p4, %p480_p9 }
  0x2c   : > { %p483_p12 = pnand %p482_p10, %p476_p11 }
  0x2e   : > { %486 = shalt.err (!%p483_p12)
}
  0x2f   : > { %398 = dma.hbm_to_vmem [thread:$0]  (!%p705_p0), %s697_s30, 128, %s701_s4, %s147_s6  }
  0x30   : > { %p853_p1 = scmp.lt.s32.totalorder %s603_s14, 3  ;;  %p854_p2 = scmp.ge.s32.totalorder %s603_s14, 1 }
  0x31   : > { %s750_s16 = scalar_lea.hbm %s844_s1, %s378_s27  ;;  %s170_s18 = scalar_lea.vmem [#allocation5], %s377_s26 }
  0x32   : > { %p741_p7 = pnand %p854_p2, %p853_p1  ;;  %s179_s19 = sshll.u32 %s170_s18, 4  ;;  %s180_s19 = int_to_ptr.vmem [resolvable:$true] %s179_s19 }
  0x33   : > { %s167_s30 = scalar_lea.sflag [#allocation6], %s688_s25  ;;  %s487_s4 = scalar_lea.hbm %s750_s16, 128 }
  0x34   : > { %s855_s7 = scalar_select %p741_p7, 1, 0 }
  0x35   : > { %p488_p9 = scmp.ne.s32.totalorder %s750_s16, %s487_s4  ;;  %s492_s27 = scalar_lea.hbm %s844_s1, 256 }
  0x36   : > { %p493_p3 = scmp.lt.u32.totalorder %s750_s16, %s844_s1  ;;  %p494_p6 = scmp.lt.u32.totalorder %s492_s27, %s487_s4 }
  0x37   : > { %p490_p11 = pnand %p488_p9, %p459_p5  ;;  %p496_p10 = scmp.lt.u32.totalorder %s487_s4, %s750_s16 }
  0x38   : > { %p495_p4 = por %p494_p6, %p493_p3 }
  0x39   : > { %p491_p13 = pneg %p490_p11 }
  0x3a   : > { %p497_p12 = por %p496_p10, %p495_p4 }
  0x3c   : > { %p498_p1 = pnand %p497_p12, %p491_p13 }
  0x3e   : > { %501 = shalt.err (!%p498_p1)
}
  0x3f   : > { %s502_s25 = scalar_lea.vmem %s180_s19, 128  ;;  %s606_s26 = smov [#allocation5]  }
  0x40   : > { %p503_p2 = scmp.ne.s32.totalorder %s180_s19, %s502_s25  ;;  %s507_s3 = sshll.u32 %s606_s26, 4  ;;  %s508_s3 = int_to_ptr.vmem [resolvable:$false] %s507_s3 }
  0x41   : > { %s509_s8 = scalar_lea.vmem %s508_s3, 256  ;;  %p510_p8 = scmp.lt.s32.totalorder %s180_s19, %s508_s3 }
  0x42   : > { %p505_p9 = pnand %p503_p2, %p459_p5  ;;  %p511_p7 = scmp.lt.s32.totalorder %s509_s8, %s502_s25 }
  0x44   : > { %p506_p11 = pneg %p505_p9  ;;  %p512_p3 = por %p511_p7, %p510_p8 }
  0x46   : > { %p513_p6 = pnand %p512_p3, %p506_p11 }
  0x48   : > { %516 = shalt.err (!%p513_p6)
}
  0x49   : > { %401 = dma.hbm_to_vmem [thread:$0]  (!%p705_p0), %s750_s16, 128, %s180_s19, %s167_s30  }
  0x4a   : > { %p856_p13 = scmp.ne.s32.totalorder %s855_s7, 0 }
  0x4b   : > { %s777_s15 = sand.u32 (!%p856_p13), 1, %s587_s10   ;;  %p857_p5 = scmp.ne.s32.totalorder (!%p856_p13), %s849_s21, 0 }
  0x4c   : > { %188 = sbr.rel (%p856_p13) target bundleno = 112 (0x70), region = 28  ;;  %s382_s18 = sshll.u32 (!%p856_p13), %s777_s15, 3 }
  0x4d   : > { %s191_s4 = scalar_lea.sflag (!%p856_p13), [#allocation3], %s777_s15  ;;  %s194_s6 = scalar_lea.vmem (!%p856_p13), [#allocation2], %s382_s18 }
  0x53   : > { %570 = dma.done.wait (%p857_p5), %s191_s4, 128  }
  0x54   : > { %572 = vsyncadd (%p857_p5), %s191_s4, 4294967168  ;;  %s200_s5 = scalar_lea.sflag [#allocation6], %s777_s15  ;;  %s203_s16 = scalar_lea.vmem [#allocation5], %s382_s18 }
  0x55   : > { %574 = dma.done.wait (%p857_p5), %s200_s5, 128  }
  0x56   : > { %576 = vsyncadd (%p857_p5), %s200_s5, 4294967168  ;;  %v236_v0 = vld [vmem:[%s194_s6] sm:$0xff]  ;;  %v237_v1 = vld [vmem:[%s203_s16] sm:$0xff]  ;;  %s386_s7 = sshll.u32 %s595_s12, 7  ;;  %s228_s19 = scalar_lea.vmem [#allocation7], %s382_s18 }
  0x57   : > { %v238_v2 = vsub.f32 %v236_v0, %v237_v1  ;;  %s263_s30 = sshll.u32 %s228_s19, 4  ;;  %s794_s28 = scalar_lea.hbm %s845_s2, %s386_s7  ;;  %s796_s30 = int_to_ptr.vmem [resolvable:$true] %s263_s30 }
  0x58   : > { %s248_s21 = scalar_lea.sflag [#allocation4], %s777_s15  ;;  %s517_s29 = scalar_lea.vmem %s796_s30, 128 }
  0x59   : > { %v239_v3 = vand.u32 2147483647, %v238_v2  ;;  %p518_p8 = scmp.ne.s32.totalorder %s796_s30, %s517_s29  ;;  %p858_p0 = scmp.ne.s32.totalorder %s850_s22, 0 }
  0x5a   : > { %s607_s12 = smov [#allocation7]  }
  0x5b   : > { %v240_v4 = vmul.f32 0.85, %v239_v3  ;;  %p519_p7 = pnand %p518_p8, %p858_p0  ;;  %s521_s25 = sshll.u32 %s607_s12, 4  ;;  %s522_s25 = int_to_ptr.vmem [resolvable:$false] %s521_s25 }
  0x5c   : > { %s523_s26 = scalar_lea.vmem %s522_s25, 256  ;;  %p524_p10 = scmp.lt.s32.totalorder %s796_s30, %s522_s25 }
  0x5d   : > { %v241_v5 = vadd.f32 0.15, %v240_v4  ;;  %p520_p4 = pneg %p519_p7  ;;  %p525_p12 = scmp.lt.s32.totalorder %s523_s26, %s517_s29 }
  0x5f   : > { %v242_v6 = vmul.f32 %v241_v5, %v239_v3  ;;  %p526_p1 = por %p525_p12, %p524_p10 }
  0x61   : > { %246 = vst [vmem:[%s228_s19] sm:$0xff] %v242_v6  ;;  %p527_p2 = pnand %p526_p1, %p520_p4 }
  0x63   : > { %530 = shalt.err (!%p527_p2)
}
  0x64   : > { %s531_s3 = scalar_lea.hbm %s794_s28, 128  ;;  %s535_s18 = scalar_lea.hbm %s845_s2, 256 }
  0x65   : > { %p532_p9 = scmp.ne.s32.totalorder %s794_s28, %s531_s3  ;;  %p536_p6 = scmp.lt.u32.totalorder %s794_s28, %s845_s2 }
  0x66   : > { %p537_p13 = scmp.lt.u32.totalorder %s535_s18, %s531_s3  ;;  %p539_p8 = scmp.lt.u32.totalorder %s531_s3, %s794_s28 }
  0x67   : > { %p533_p11 = pnand %p532_p9, %p858_p0 }
  0x68   : > { %p538_p5 = por %p537_p13, %p536_p6 }
  0x69   : > { %p534_p3 = pneg %p533_p11 }
  0x6a   : > { %p540_p7 = por %p539_p8, %p538_p5 }
  0x6c   : > { %p541_p4 = pnand %p540_p7, %p534_p3 }
  0x6e   : > { %544 = shalt.err (!%p541_p4)
}
  0x6f   : > { %393 = dma.vmem_to_hbm [thread:$0]  (%p858_p0), %s796_s30, 128, %s794_s28, %s248_s21  }
  0x70 PF: > { %s275_s5 = sand.u32 1, %s583_s9   ;;  %p859_p10 = scmp.ne.s32.totalorder %s851_s24, 0 }
  0x71   : > { %p860_p12 = scmp.ge.s32.totalorder %s603_s14, 2  ;;  %s276_s16 = scalar_lea.sflag [#allocation4], %s275_s5 }
  0x73   : > { %p403_p1 = pnand %p860_p12, %p859_p10 }
  0x75   : > { %578 = dma.done.wait (!%p403_p1), %s276_s16, 128  }
  0x76   : > { %580 = vsyncadd (!%p403_p1), %s276_s16, 4294967168  ;;  %s21_s14 = sadd.s32 1, %s603_s14   ;;  %s861_s9 = smov %s587_s10 }
  0x77   : > { %p18_p2 = scmp.ge.s32.totalorder %s21_s14, 4   ;;  %s862_s10 = smov %s591_s11 }
  0x78   : > { %s863_s11 = smov %s679_s23  ;;  %s864_s12 = smov %s599_s13 }
  0x79   : > { %s865_s13 = smov %s867_s17  ;;  %20 = sbr.rel (!%p18_p2) target bundleno = 8 (0x8), region = 90 }
  0x80   :  { %281 = vsyncpa [#allocation3], 1 }
  0x81   :  { %283 = vsyncpa [#allocation3 + $0x1], 1 }
  0x82   :  { %284 = vsyncpa [#allocation6], 1 }
  0x83   :  { %286 = vsyncpa [#allocation6 + $0x1], 1 }
  0x84   :  { %287 = vsyncpa [#allocation4], 1 }
  0x85   :  { %289 = vsyncpa [#allocation4 + $0x1], 1 }

</bundles_post_ra>
